<compile_context>
chip_gen: v6e
topology: v6e:2x2x1
jax: 0.10.0
libtpu: 0.0.40
codegen_flags: <defaults>
</compile_context>

<pallas_src>
import jax
import jax.numpy as jnp
from jax import lax
from jax.experimental import pallas as pl
from jax.experimental.pallas import tpu as pltpu


def _global_attn_kernel(src_len_ref,   # SMEM (B,) int32    (scalar prefetch)
                        q_ref,         # VMEM (1, tT, D)    query tile
                        k_ref,         # VMEM (1, Sp, D)    encoder outputs (lane-padded)
                        wc_ref,        # VMEM (D, D)        linear_out weight, context half (pre-T)
                        wq_ref,        # VMEM (D, D)        linear_out weight, query half   (pre-T)
                        attn_h_ref,    # VMEM (1, tT, D)    out
                        attn_ref):     # VMEM (1, tT, Sp)   out
    b = pl.program_id(0)

    q = q_ref[0]                        # (tT, D)  native dtype (bf16 stays bf16 on MXU)
    k = k_ref[0]                        # (Sp, D)

    # Data-independent half of the output projection first so the MXU overlaps
    # the EUP/XLU softmax work below.
    hq = jnp.dot(q, wq_ref[...], preferred_element_type=jnp.float32)      # (tT, D)

    # --- score: dot attention  (tT, Sp) = q @ k^T ----------------------------
    scores = lax.dot_general(q, k, (((1,), (1,)), ((), ())),
                             preferred_element_type=jnp.float32)

    # --- length masking (also masks the lane-padding columns) ----------------
    length = src_len_ref[b]
    col = lax.broadcasted_iota(jnp.int32, scores.shape, 1)
    scores = jnp.where(col < length, scores, -jnp.inf)

    # --- exact softmax over the source axis (f32 stats) ----------------------
    m = jnp.max(scores, axis=-1, keepdims=True)
    m = jnp.maximum(m, -1e30)                        # guard fully-masked rows
    p = jnp.exp(scores - m)
    denom = jnp.sum(p, axis=-1, keepdims=True)
    denom = jnp.where(denom > 0.0, denom, 1.0)       # guard src_len == 0
    attn = p / denom                                 # exact: rows sum to 1
    attn_ref[0] = attn.astype(attn_ref.dtype)

    # --- context: c = attn @ enc_out (matmul in the input dtype, f32 acc) ----
    c = jnp.dot(attn.astype(k.dtype), k, preferred_element_type=jnp.float32)

    # --- linear_out([c, q]) + tanh; weights pre-split, so no concat ----------
    h = jnp.dot(c.astype(wc_ref.dtype), wc_ref[...],
                preferred_element_type=jnp.float32) + hq
    attn_h_ref[0] = jnp.tanh(h).astype(attn_h_ref.dtype)


def _vmem_capacity_bytes():
    """Physical VMEM per core (generation-aware), conservative fallback."""
    try:
        cap = getattr(pltpu.get_tpu_info(), "vmem_capacity_bytes", None)
        if cap:
            return int(cap)
    except Exception:
        pass
    return 64 * 1024 * 1024          # v7x-sized conservative default


def _tile_footprint_bytes(tT, s_pad, d, itemsize):
    """Per-grid-step VMEM: double-buffered blocks + f32 in-kernel intermediates."""
    resident = 2 * itemsize * (s_pad * d + 2 * d * d)      # enc_out + split weights
    per_tile = 2 * itemsize * tT * (2 * d + s_pad)         # q, attn_h, align blocks
    interm   = 4 * tT * (3 * s_pad + 4 * d)                # scores/p/attn + c/h/hq (f32)
    return resident + per_tile + interm


def _pick_query_tile(T, s_pad, d, itemsize, vmem_budget):
    """Largest query tile (divisor of T, capped at 1024) whose working set fits."""
    divisors = [c for c in (1024, 512, 256, 128, 64, 32, 16, 8)
                if c < T and T % c == 0]
    candidates = ([T] if T <= 1024 else []) + divisors
    if not candidates:
        candidates = [T]     # TODO(synk): pad/mask the query axis for odd large T
    for tT in candidates:
        if _tile_footprint_bytes(tT, s_pad, d, itemsize) <= vmem_budget:
            return tT
    return candidates[-1]


@jax.jit
def global_attention(src, enc_out, src_len, w_out):
    """Dot-product GlobalAttention forward.

    src:     (B, T, D)  query vectors
    enc_out: (B, S, D)  encoder outputs
    src_len: (B,)       valid source lengths (int)
    w_out:   (D, 2D)    linear_out weight (PyTorch layout, no bias)

    Returns (attn_h (B, T, D), align_vectors (B, T, S)).
    """
    B, T, D = src.shape
    _, S, _ = enc_out.shape
    dtype = src.dtype
    itemsize = jnp.dtype(dtype).itemsize

    # Pre-split / pre-transpose linear_out's (D, 2D) weight (one-time HBM op):
    # linear_out([c, q]) == c @ w_c + q @ w_q.
    w_c = jnp.transpose(w_out[:, :D])      # (D, D)
    w_q = jnp.transpose(w_out[:, D:])      # (D, D)

    # Lane-dense align output & score matmul: pad the source axis to a
    # multiple of 128; the length mask zeroes the padded columns exactly.
    S_pad = S if S % 128 == 0 else ((S + 127) // 128) * 128
    enc_p = enc_out if S_pad == S else jnp.pad(
        enc_out, ((0, 0), (0, S_pad - S), (0, 0)))

    vmem_cap = _vmem_capacity_bytes()
    tT = _pick_query_tile(T, S_pad, D, itemsize, int(vmem_cap * 0.85))
    n_t = T // tT
    footprint = _tile_footprint_bytes(tT, S_pad, D, itemsize)
    vmem_limit = int(min(vmem_cap * 0.9,
                         max(32 * 1024 * 1024, footprint * 2)))

    grid_spec = pltpu.PrefetchScalarGridSpec(
        num_scalar_prefetch=1,
        grid=(B, n_t),
        in_specs=[
            pl.BlockSpec((1, tT, D), lambda b, t, lens: (b, t, 0)),      # src tile
            pl.BlockSpec((1, S_pad, D), lambda b, t, lens: (b, 0, 0)),   # enc_out (resident over t)
            pl.BlockSpec((D, D), lambda b, t, lens: (0, 0)),             # w_c
            pl.BlockSpec((D, D), lambda b, t, lens: (0, 0)),             # w_q
        ],
        out_specs=[
            pl.BlockSpec((1, tT, D), lambda b, t, lens: (b, t, 0)),      # attn_h
            pl.BlockSpec((1, tT, S_pad), lambda b, t, lens: (b, t, 0)),  # align_vectors
        ],
    )

    cost = pl.CostEstimate(
        flops=4 * B * T * S_pad * D + 4 * B * T * D * D,
        transcendentals=B * T * (S_pad + D),
        bytes_accessed=itemsize * (2 * B * T * D + B * S_pad * D
                                   + 2 * D * D + B * T * S_pad),
    )

    attn_h, align = pl.pallas_call(
        _global_attn_kernel,
        out_shape=(
            jax.ShapeDtypeStruct((B, T, D), dtype),
            jax.ShapeDtypeStruct((B, T, S_pad), dtype),
        ),
        grid_spec=grid_spec,
        compiler_params=pltpu.CompilerParams(
            dimension_semantics=("parallel", "parallel"),
            vmem_limit_bytes=vmem_limit),
        cost_estimate=cost,
    )(src_len.astype(jnp.int32), src, enc_p, w_c, w_q)

    return attn_h, align[:, :, :S]


def _reference(src, enc_out, src_len, w_out):
    """Pure-JAX reference mirroring the PyTorch forward (dot + softmax).

    Einsums use HIGHEST precision so the reference is the true f32 answer.
    """
    S = enc_out.shape[1]
    align = jnp.einsum('btd,bsd->bts', src, enc_out, precision='highest')
    mask = jnp.arange(S)[None, None, :] < src_len[:, None, None]
    align = jnp.where(mask, align, -jnp.inf)
    av = jax.nn.softmax(align, axis=-1)
    c = jnp.einsum('bts,bsd->btd', av, enc_out, precision='highest')
    concat = jnp.concatenate([c, src], axis=-1)                  # (B, T, 2D)
    attn_h = jnp.tanh(jnp.einsum('bte,de->btd', concat, w_out,
                                 precision='highest'))
    return attn_h, av


if __name__ == "__main__":
    B, T, S, D = 2, 8, 8, 32

    key = jax.random.PRNGKey(0)
    k1, k2, k3 = jax.random.split(key, 3)
    src = jax.random.normal(k1, (B, T, D), dtype=jnp.float32)
    enc_out = jax.random.normal(k2, (B, S, D), dtype=jnp.float32)
    # linear_out: nn.Linear(2*dim, dim, bias=False) -> weight shape (dim, 2*dim)
    w_out = (jax.random.normal(k3, (D, 2 * D), dtype=jnp.float32)
             / jnp.sqrt(2.0 * D))
    src_len = jnp.array([S, S - 3], dtype=jnp.int32)

    attn_h, align = global_attention(src, enc_out, src_len, w_out)
    jax.block_until_ready((attn_h, align))

    ref_h, ref_a = _reference(src, enc_out, src_len, w_out)

    # Exact softmax: rows sum to 1 and masked columns are exactly zero
    # (this is what the approximate-reciprocal version violated).
    row_sums = jnp.sum(align, axis=-1)
    assert jnp.allclose(row_sums, 1.0, atol=1e-4), \
        float(jnp.max(jnp.abs(row_sums - 1.0)))
    assert float(jnp.max(jnp.abs(align[1, :, S - 3:]))) <= 1e-6

    # Tolerance sized for TPU MXU default-precision f32 matmuls (operands are
    # rounded bf16 per pass) compared against the HIGHEST-precision reference;
    # the softmax itself is exact (see row-sum check above).
    assert jnp.allclose(attn_h, ref_h, atol=1e-2, rtol=1e-2), \
        float(jnp.max(jnp.abs(attn_h - ref_h)))
    assert jnp.allclose(align, ref_a, atol=1e-2, rtol=1e-2), \
        float(jnp.max(jnp.abs(align - ref_a)))

    print("KERNEL_OK")
</pallas_src>

<mosaic_0001>
module attributes {stable_mosaic.version = 11 : i64} {
  func.func @_global_attn_kernel(%arg0: i32, %arg1: i32, %arg2: memref<2xi32, #tpu.memory_space<smem>>, %arg3: memref<1x8x32xf32, #tpu.memory_space<vmem>>, %arg4: memref<1x128x32xf32, #tpu.memory_space<vmem>>, %arg5: memref<32x32xf32, #tpu.memory_space<vmem>>, %arg6: memref<32x32xf32, #tpu.memory_space<vmem>>, %arg7: memref<1x8x32xf32, #tpu.memory_space<vmem>>, %arg8: memref<1x8x128xf32, #tpu.memory_space<vmem>>) attributes {dimension_semantics = [#tpu.dimension_semantics<parallel>, #tpu.dimension_semantics<parallel>], iteration_bounds = array<i64: 2, 1>, scalar_prefetch = 1 : i64, scratch_operands = 0 : i64, tpu.core_type = #tpu.core_type<tc>, window_params = [{transform_indices = @transform_0, window_bounds = array<i64: 1, 8, 32>}, {transform_indices = @transform_1, window_bounds = array<i64: 1, 128, 32>}, {pipeline_mode = #tpu.pipeline_mode<synchronous>, transform_indices = @transform_2, window_bounds = array<i64: 32, 32>}, {pipeline_mode = #tpu.pipeline_mode<synchronous>, transform_indices = @transform_3, window_bounds = array<i64: 32, 32>}, {transform_indices = @transform_4, window_bounds = array<i64: 1, 8, 32>}, {transform_indices = @transform_5, window_bounds = array<i64: 1, 8, 128>}]} {
    %c0 = arith.constant 0 : index
    %c0_0 = arith.constant 0 : index
    %c0_1 = arith.constant 0 : index
    %0 = vector.load %arg3[%c0, %c0_0, %c0_1] : memref<1x8x32xf32, #tpu.memory_space<vmem>>, vector<1x8x32xf32>
    %1 = vector.shape_cast %0 : vector<1x8x32xf32> to vector<8x32xf32>
    %c0_2 = arith.constant 0 : index
    %c0_3 = arith.constant 0 : index
    %c0_4 = arith.constant 0 : index
    %2 = vector.load %arg4[%c0_2, %c0_3, %c0_4] : memref<1x128x32xf32, #tpu.memory_space<vmem>>, vector<1x128x32xf32>
    %3 = vector.shape_cast %2 : vector<1x128x32xf32> to vector<128x32xf32>
    %c0_5 = arith.constant 0 : index
    %c0_6 = arith.constant 0 : index
    %4 = vector.load %arg6[%c0_5, %c0_6] : memref<32x32xf32, #tpu.memory_space<vmem>>, vector<32x32xf32>
    %cst = arith.constant dense<0.000000e+00> : vector<8x32xf32>
    %5 = tpu.matmul %1, %4, %cst {dimension_numbers = #tpu.dot_dimension_numbers<[1], [0], [0], [1], [0, 0, 1, 1], [], []>} : vector<8x32xf32>, vector<32x32xf32>, vector<8x32xf32> -> vector<8x32xf32>
    %cst_7 = arith.constant dense<0.000000e+00> : vector<8x128xf32>
    %6 = tpu.matmul %1, %3, %cst_7 {dimension_numbers = #tpu.dot_dimension_numbers<[1], [1], [0], [0], [0, 0, 1, 0], [], []>} : vector<8x32xf32>, vector<128x32xf32>, vector<8x128xf32> -> vector<8x128xf32>
    %7 = arith.index_cast %arg0 : i32 to index
    %8 = memref.load %arg2[%7] : memref<2xi32, #tpu.memory_space<smem>>
    %9 = tpu.iota {dimensions = array<i32: 1>} : vector<8x128xi32>
    %10 = vector.broadcast %8 : i32 to vector<8x128xi32>
    %11 = arith.cmpi slt, %9, %10 : vector<8x128xi32>
    %cst_8 = arith.constant 0xFF800000 : f32
    %12 = vector.broadcast %cst_8 : f32 to vector<8x128xf32>
    %13 = arith.select %11, %6, %12 : vector<8x128xi1>, vector<8x128xf32>
    %cst_9 = arith.constant dense<0xFF800000> : vector<8xf32>
    %14 = vector.multi_reduction <maximumf>, %13, %cst_9 [1] : vector<8x128xf32> to vector<8xf32>
    %15 = vector.shape_cast %14 : vector<8xf32> to vector<8x1xf32>
    %cst_10 = arith.constant -1.000000e+30 : f32
    %16 = vector.broadcast %cst_10 : f32 to vector<8x1xf32>
    %17 = arith.maximumf %15, %16 : vector<8x1xf32>
    %18 = vector.broadcast %17 : vector<8x1xf32> to vector<8x128xf32>
    %19 = arith.subf %13, %18 : vector<8x128xf32>
    %20 = math.exp %19 : vector<8x128xf32>
    %cst_11 = arith.constant dense<0.000000e+00> : vector<8xf32>
    %21 = vector.multi_reduction <add>, %20, %cst_11 [1] : vector<8x128xf32> to vector<8xf32>
    %22 = vector.shape_cast %21 : vector<8xf32> to vector<8x1xf32>
    %cst_12 = arith.constant 0.000000e+00 : f32
    %23 = vector.broadcast %cst_12 : f32 to vector<8x1xf32>
    %24 = arith.cmpf ogt, %22, %23 : vector<8x1xf32>
    %cst_13 = arith.constant 1.000000e+00 : f32
    %25 = vector.broadcast %cst_13 : f32 to vector<8x1xf32>
    %26 = arith.select %24, %22, %25 : vector<8x1xi1>, vector<8x1xf32>
    %27 = vector.broadcast %26 : vector<8x1xf32> to vector<8x128xf32>
    %28 = arith.divf %20, %27 : vector<8x128xf32>
    %c0_14 = arith.constant 0 : index
    %c0_15 = arith.constant 0 : index
    %c0_16 = arith.constant 0 : index
    %29 = vector.load %arg8[%c0_14, %c0_15, %c0_16] : memref<1x8x128xf32, #tpu.memory_space<vmem>>, vector<1x8x128xf32>
    %30 = vector.shape_cast %29 : vector<1x8x128xf32> to vector<8x128xf32>
    %31 = vector.shape_cast %28 : vector<8x128xf32> to vector<1x8x128xf32>
    tpu.vector_store %arg8[%c0_14, %c0_15, %c0_16], %31 {strides = array<i32>} : memref<1x8x128xf32, #tpu.memory_space<vmem>>, vector<1x8x128xf32>,
    %cst_17 = arith.constant dense<0.000000e+00> : vector<8x32xf32>
    %32 = tpu.matmul %28, %3, %cst_17 {dimension_numbers = #tpu.dot_dimension_numbers<[1], [0], [0], [1], [0, 0, 1, 1], [], []>} : vector<8x128xf32>, vector<128x32xf32>, vector<8x32xf32> -> vector<8x32xf32>
    %c0_18 = arith.constant 0 : index
    %c0_19 = arith.constant 0 : index
    %33 = vector.load %arg5[%c0_18, %c0_19] : memref<32x32xf32, #tpu.memory_space<vmem>>, vector<32x32xf32>
    %cst_20 = arith.constant dense<0.000000e+00> : vector<8x32xf32>
    %34 = tpu.matmul %32, %33, %cst_20 {dimension_numbers = #tpu.dot_dimension_numbers<[1], [0], [0], [1], [0, 0, 1, 1], [], []>} : vector<8x32xf32>, vector<32x32xf32>, vector<8x32xf32> -> vector<8x32xf32>
    %35 = arith.addf %34, %5 : vector<8x32xf32>
    %36 = math.tanh %35 : vector<8x32xf32>
    %c0_21 = arith.constant 0 : index
    %c0_22 = arith.constant 0 : index
    %c0_23 = arith.constant 0 : index
    %37 = vector.load %arg7[%c0_21, %c0_22, %c0_23] : memref<1x8x32xf32, #tpu.memory_space<vmem>>, vector<1x8x32xf32>
    %38 = vector.shape_cast %37 : vector<1x8x32xf32> to vector<8x32xf32>
    %39 = vector.shape_cast %36 : vector<8x32xf32> to vector<1x8x32xf32>
    tpu.vector_store %arg7[%c0_21, %c0_22, %c0_23], %39 {strides = array<i32>} : memref<1x8x32xf32, #tpu.memory_space<vmem>>, vector<1x8x32xf32>,
    return
  }
  func.func @transform_0(%arg0: i32, %arg1: i32, %arg2: memref<2xi32, #tpu.memory_space<smem>>) -> (i32, i32, i32) {
    %c0_i32 = arith.constant 0 : i32
    %c0_i32_0 = arith.constant 0 : i32
    return %arg0, %arg1, %c0_i32 : i32, i32, i32
  }
  func.func @transform_1(%arg0: i32, %arg1: i32, %arg2: memref<2xi32, #tpu.memory_space<smem>>) -> (i32, i32, i32) {
    %c0_i32 = arith.constant 0 : i32
    %c0_i32_0 = arith.constant 0 : i32
    %c0_i32_1 = arith.constant 0 : i32
    return %arg0, %c0_i32, %c0_i32_0 : i32, i32, i32
  }
  func.func @transform_2(%arg0: i32, %arg1: i32, %arg2: memref<2xi32, #tpu.memory_space<smem>>) -> (i32, i32) {
    %c0_i32 = arith.constant 0 : i32
    %c0_i32_0 = arith.constant 0 : i32
    %c0_i32_1 = arith.constant 0 : i32
    return %c0_i32, %c0_i32_0 : i32, i32
  }
  func.func @transform_3(%arg0: i32, %arg1: i32, %arg2: memref<2xi32, #tpu.memory_space<smem>>) -> (i32, i32) {
    %c0_i32 = arith.constant 0 : i32
    %c0_i32_0 = arith.constant 0 : i32
    %c0_i32_1 = arith.constant 0 : i32
    return %c0_i32, %c0_i32_0 : i32, i32
  }
  func.func @transform_4(%arg0: i32, %arg1: i32, %arg2: memref<2xi32, #tpu.memory_space<smem>>) -> (i32, i32, i32) {
    %c0_i32 = arith.constant 0 : i32
    %c0_i32_0 = arith.constant 0 : i32
    return %arg0, %arg1, %c0_i32 : i32, i32, i32
  }
  func.func @transform_5(%arg0: i32, %arg1: i32, %arg2: memref<2xi32, #tpu.memory_space<smem>>) -> (i32, i32, i32) {
    %c0_i32 = arith.constant 0 : i32
    %c0_i32_0 = arith.constant 0 : i32
    return %arg0, %arg1, %c0_i32 : i32, i32, i32
  }
}

</mosaic_0001>

<bundles_post_ra>
// kernel: global_attention.1
= control target key start
LH: loop header
LB: loop body
LE: loop exit
PB: predicated region body
PF: predicated region fallthrough
CT: control target
= control target key end

     0   :  { %s1517_s0 = inlined_call_operand.vmem [shape: s32[2], index: 0, kind: input, shape index: {}]   ;;  %s1518_s1 = inlined_call_operand.vmem [shape: f32[2,8,32], index: 1, kind: input, shape index: {}]   ;;  %s1519_s2 = inlined_call_operand.vmem [shape: f32[2,128,32], index: 2, kind: input, shape index: {}]   ;;  %s1520_s3 = inlined_call_operand.vmem [shape: f32[32,32], index: 3, kind: input, shape index: {}]   ;;  %s1521_s4 = inlined_call_operand.vmem [shape: f32[32,32], index: 4, kind: input, shape index: {}]   ;;  %s1522_s5 = inlined_call_operand.hbm [shape: f32[2,8,32], index: 5, kind: output, shape index: {0}]   ;;  %s1523_s6 = inlined_call_operand.hbm [shape: f32[2,8,128], index: 6, kind: output, shape index: {1}]  }
   0x1   :  { %s12_s23 = sshll.u32 %s1517_s0, 4  ;;  %s13_s23 = int_to_ptr.vmem [resolvable:$true] %s12_s23 }
   0x2   :  { %s1057_s24 = scalar_lea.vmem %s13_s23, 16  ;;  %p1062_p1 = scmp.lt.s32.totalorder %s13_s23, %s13_s23 }
   0x3   :  { %p1058_p0 = scmp.ne.s32.totalorder %s13_s23, %s1057_s24  ;;  %p1063_p2 = scmp.lt.s32.totalorder %s1057_s24, %s1057_s24 }
   0x5   :  { %p1064_p3 = por %p1063_p2, %p1062_p1 }
   0x7   :  { %p1065_p4 = pnand %p1064_p3, %p1058_p0 }
   0x9   :  { %1068 = shalt.err (!%p1065_p4)  }
   0xa   :  { %s1179_s25 = smov [#allocation3]  }
   0xb   :  { %15 = dma.vmem_to_smem %s13_s23, 16, %s1179_s25, [#allocation2] }
   0xc   :  { %1145 = dma.done.wait [#allocation2], 16 }
   0xd   :  { %1146 = vsyncadd [#allocation2], 4294967280 }
   0xe   :  { %17 = sfence }
   0xf   :  { %18 = vsyncpa [#allocation5], 0 }
  0x10   :  { %20 = vsyncpa [#allocation5 + $0x1], 0 }
  0x11   :  { %21 = vsyncpa [#allocation7], 0 }
  0x12   :  { %23 = vsyncpa [#allocation7 + $0x1], 0  ;;  %s1222_s26 = smov 0   ;;  %s1224_s0 = smov 0  }
  0x13   :  { %s1226_s27 = smov 0   ;;  %s1228_s28 = smov 0  }
  0x14   :  { %s1230_s29 = smov 0   ;;  %s1232_s30 = smov 0  }
  0x15 LB: > { %s816_s7 = sadd.s32 4294967295, %s1177_s30   ;;  %s817_s8 = sadd.s32 4294967294, %s1177_s30   ;;  %s1177_s30 = sphi %s1232_s30, %s29_s30   ;;  %s1173_s29 = sphi %s1230_s29, %s1532_s29   ;;  %s1169_s28 = sphi %s1228_s28, %s1531_s28   ;;  %s1165_s27 = sphi %s1226_s27, %s1530_s27   ;;  %s1161_s0 = sphi %s1224_s0, %s1529_s0   ;;  %s1157_s26 = sphi %s1222_s26, %s1528_s26  }
  0x16   : > { %s41_s9 = sadd.s32 1, %s1173_s29  ;;  %s146_s10 = sadd.s32 1, %s1165_s27 }
  0x17   : > { %p43_p5 = scmp.ge.s32.totalorder %s41_s9, 2  ;;  %p156_p6 = scmp.ne.s32.totalorder %s1165_s27, %s1161_s0 }
  0x18   : > { %p157_p7 = scmp.eq.s32.totalorder %s816_s7, 1  ;;  %p162_p8 = scmp.ne.s32.totalorder %s1161_s0, %s1157_s26 }
  0x19   : > { %s1534_s9 = smov (%p43_p5, %s41_s9), 0  ;;  %p163_p10 = scmp.eq.s32.totalorder %s817_s8, 1 }
  0x1a   : > { %p1262_p9 = por %p157_p7, %p156_p6  ;;  %s141_s12 = ssub.s32 %s1173_s29, %s1534_s9 }
  0x1b   : > { %p820_p11 = scmp.ge.s32.totalorder %s1177_s30, 1  ;;  %p144_p12 = scmp.eq.s32.totalorder %s141_s12, 0 }
  0x1c   : > { %p1269_p13 = por %p163_p10, %p162_p8  ;;  %p233_p0 = scmp.lt.s32.totalorder %s1177_s30, 3 }
  0x1d   : > { %s1275_s14 = scalar_select %p144_p12, %s1165_s27, %s146_s10  }
  0x1e   : > { %p234_p1 = pnand %p820_p11, %p233_p0 }
  0x1f   : > { %p273_p2 = scmp.lt.s32.totalorder (!%p234_p1), %s1169_s28, 1  ;;  %s498_s24 = sld [smem:[#allocation3 + %s1169_s28]] (!%p234_p1) }
  0x20   : > { %237 = sbr.rel (%p234_p1) target bundleno = 1028 (0x404), region = 36  ;;  %s1426_s18 = sand.u32 (!%p234_p1), 1, %s1161_s0  }
  0x21   : > { %s1524_s12 = sshll.u32 (!%p234_p1), %s1169_s28, 7  ;;  %s672_s21 = scalar_lea.sflag (!%p234_p1), [#allocation7], %s1426_s18 }
  0x22   : > { %s698_s17 = scalar_lea.hbm (!%p234_p1), %s1523_s6, %s1524_s12 }
  0x25   : > { %v1180_v0 = vmov 0.0   ;;  %vm1181_vm0 = vmmov 0   ;;  %s1282_s15 = scalar_select %p273_p2, %s1169_s28, 1  ;;  %vm306_vm1 = vcmask 261120   ;;  %v499_v18 = vlaneseq  ;;  %v305_v24 = vld [vmem:[%s1521_s4 + $0x18] sm:$0xff]  ;;  %v304_v25 = vld [vmem:[%s1521_s4 + $0x10] sm:$0xff] }
  0x26   : > { %907 = vmatprep.subr.mxu1 %v1180_v0  ;;  %939 = vmatprep.mubr.msk.f32.mxu1 %vm1181_vm0, %v1180_v0  ;;  %v501_v20 = vstv %s498_s24  ;;  %v303_v26 = vld [vmem:[%s1521_s4 + $0x8] sm:$0xff]  ;;  %v302_v27 = vld [vmem:[%s1521_s4] sm:$0xff]  ;;  %v590_v39 = vld [vmem:[%s1520_s3 + $0x18] sm:$0xff] }
  0x27   : > { %896 = vmatprep.subr.mxu0 %v1180_v0  ;;  %904 = vmatprep.mubr.msk.f32.mxu0 %vm1181_vm0, %v1180_v0  ;;  %s851_s16 = sshll.u32 %s1282_s15, 7  ;;  %s823_s20 = sshll.u32 %s1282_s15, 3  ;;  %v500_v19 = vand.u32 127, %v499_v18  ;;  %v589_v40 = vld [vmem:[%s1520_s3 + $0x10] sm:$0xff]  ;;  %v588_v41 = vld [vmem:[%s1520_s3 + $0x8] sm:$0xff]  ;;  %v587_v42 = vld [vmem:[%s1520_s3] sm:$0xff] }
  0x28   : > { %s1291_s19 = scalar_lea.vmem %s1519_s2, %s851_s16  ;;  %s279_s23 = scalar_lea.vmem %s1518_s1, %s823_s20  ;;  %897 = vmatpush3.msra.mxu0 %v305_v24 }
  0x29   : > { %v1294_v1 = vld [vmem:[%s1291_s19 + $0x78] sm:$0xff]  ;;  %v1300_v2 = vld [vmem:[%s1291_s19 + $0x70] sm:$0xff]  ;;  %v1306_v3 = vld [vmem:[%s1291_s19 + $0x68] sm:$0xff]  ;;  %vm502_vm2 = vcmp.lt.s32.totalorder %v500_v19, %v501_v20  ;;  %898 = vmatprep.subr.mxu0 %v1180_v0 }
  0x2a   : > { %908 = vmatpush3.xpose.msk.msra.mxu1 %vm306_vm1, %v1294_v1  ;;  %v1312_v4 = vld [vmem:[%s1291_s19 + $0x60] sm:$0xff]  ;;  %v1318_v5 = vld [vmem:[%s1291_s19 + $0x58] sm:$0xff]  ;;  %v1324_v6 = vld [vmem:[%s1291_s19 + $0x50] sm:$0xff]  ;;  %899 = vmatpush3.msra.mxu0 %v304_v25 }
  0x2b   : > { %909 = vmatprep.subr.mxu1 %v1180_v0  ;;  %v1330_v7 = vld [vmem:[%s1291_s19 + $0x48] sm:$0xff]  ;;  %v1336_v8 = vld [vmem:[%s1291_s19 + $0x40] sm:$0xff]  ;;  %v1342_v9 = vld [vmem:[%s1291_s19 + $0x38] sm:$0xff]  ;;  %900 = vmatprep.subr.mxu0 %v1180_v0 }
  0x2c   : > { %v1348_v10 = vld [vmem:[%s1291_s19 + $0x30] sm:$0xff]  ;;  %v1354_v11 = vld [vmem:[%s1291_s19 + $0x28] sm:$0xff]  ;;  %v290_v12 = vld [vmem:[%s1291_s19 + $0x20] sm:$0xff]  ;;  %901 = vmatpush3.msra.mxu0 %v303_v26 }
  0x2d   : > { %v289_v13 = vld [vmem:[%s1291_s19 + $0x18] sm:$0xff]  ;;  %v288_v14 = vld [vmem:[%s1291_s19 + $0x10] sm:$0xff]  ;;  %v287_v15 = vld [vmem:[%s1291_s19 + $0x8] sm:$0xff]  ;;  %902 = vmatprep.subr.mxu0 %v1180_v0 }
  0x2e   : > { %910 = vmatpush3.xpose.msk.msra.mxu1 %vm306_vm1, %v1300_v2  ;;  %v286_v16 = vld [vmem:[%s1291_s19] sm:$0xff]  ;;  %903 = vmatpush3.msra.mxu0 %v302_v27  ;;  %s821_s19 = sshll.u32 %s1426_s18, 3 }
  0x2f   : > { %911 = vmatprep.subr.mxu1 %v1180_v0  ;;  %v285_v17 = vld [vmem:[%s279_s23] sm:$0xff]  ;;  %942 = vmatprep.subr.mxu0 %v1180_v0  ;;  %s272_s24 = scalar_lea.vmem [#allocation6], %s821_s19  ;;  %s1182_s23 = smov [#allocation6]  }
  0x30   : > { %905 = vmatmul.mubr.msk.f32.vlgmr.msra.gmra.mxu0 %vm306_vm1, %v285_v17  ;;  %s700_s20 = sshll.u32 %s272_s24, 4  ;;  %s1073_s25 = sshll.u32 %s1182_s23, 4  ;;  %s701_s20 = int_to_ptr.vmem [resolvable:$true] %s700_s20  ;;  %s1074_s25 = int_to_ptr.vmem [resolvable:$false] %s1073_s25 }
  0x31   : > { %943 = vmatpush3.msra.mxu0 %v1294_v1  ;;  %974 = vmatprep.mubr.msk.f32.mxu0 %vm1181_vm0, %v1180_v0  ;;  %s1069_s22 = scalar_lea.vmem %s701_s20, 128  ;;  %s1075_s7 = scalar_lea.vmem %s1074_s25, 256 }
  0x32   : > { %912 = vmatpush3.xpose.msk.msra.mxu1 %vm306_vm1, %v1306_v3  ;;  %944 = vmatprep.subr.mxu0 %v1180_v0  ;;  %p1070_p3 = scmp.ne.s32.totalorder %s701_s20, %s1069_s22  ;;  %p1076_p6 = scmp.lt.s32.totalorder %s701_s20, %s1074_s25 }
  0x33   : > { %913 = vmatprep.subr.mxu1 %v1180_v0  ;;  %945 = vmatpush3.msra.mxu0 %v1300_v2  ;;  %p1077_p7 = scmp.lt.s32.totalorder %s1075_s7, %s1069_s22 }
  0x34   : > { %946 = vmatprep.subr.mxu0 %v1180_v0  ;;  %p1071_p4 = pnand %p1070_p3, %p1262_p9 }
  0x35   : > { %947 = vmatpush3.msra.mxu0 %v1306_v3  ;;  %p1078_p8 = por %p1077_p7, %p1076_p6 }
  0x36   : > { %914 = vmatpush3.xpose.msk.msra.mxu1 %vm306_vm1, %v1312_v4  ;;  %948 = vmatprep.subr.mxu0 %v1180_v0  ;;  %p1072_p5 = pneg %p1071_p4 }
  0x37   : > { %915 = vmatprep.subr.mxu1 %v1180_v0  ;;  %949 = vmatpush3.msra.mxu0 %v1312_v4 }
  0x38   : > { %950 = vmatprep.subr.mxu0 %v1180_v0  ;;  %p1079_p10 = pnand %p1078_p8, %p1072_p5 }
  0x39   : > { %951 = vmatpush3.msra.mxu0 %v1318_v5 }
  0x3a   : > { %916 = vmatpush3.xpose.msk.msra.mxu1 %vm306_vm1, %v1318_v5  ;;  %952 = vmatprep.subr.mxu0 %v1180_v0 }
  0x3b   : > { %917 = vmatprep.subr.mxu1 %v1180_v0  ;;  %953 = vmatpush3.msra.mxu0 %v1324_v6 }
  0x3c   : > { %954 = vmatprep.subr.mxu0 %v1180_v0 }
  0x3d   : > { %955 = vmatpush3.msra.mxu0 %v1330_v7 }
  0x3e   : > { %918 = vmatpush3.xpose.msk.msra.mxu1 %vm306_vm1, %v1324_v6  ;;  %956 = vmatprep.subr.mxu0 %v1180_v0 }
  0x3f   : > { %919 = vmatprep.subr.mxu1 %v1180_v0  ;;  %957 = vmatpush3.msra.mxu0 %v1336_v8 }
  0x40   : > { %958 = vmatprep.subr.mxu0 %v1180_v0 }
  0x41   : > { %959 = vmatpush3.msra.mxu0 %v1342_v9 }
  0x42   : > { %920 = vmatpush3.xpose.msk.msra.mxu1 %vm306_vm1, %v1330_v7  ;;  %960 = vmatprep.subr.mxu0 %v1180_v0 }
  0x43   : > { %921 = vmatprep.subr.mxu1 %v1180_v0  ;;  %961 = vmatpush3.msra.mxu0 %v1348_v10 }
  0x44   : > { %962 = vmatprep.subr.mxu0 %v1180_v0 }
  0x45   : > { %963 = vmatpush3.msra.mxu0 %v1354_v11 }
  0x46   : > { %922 = vmatpush3.xpose.msk.msra.mxu1 %vm306_vm1, %v1336_v8  ;;  %964 = vmatprep.subr.mxu0 %v1180_v0 }
  0x47   : > { %923 = vmatprep.subr.mxu1 %v1180_v0  ;;  %965 = vmatpush3.msra.mxu0 %v290_v12 }
  0x48   : > { %966 = vmatprep.subr.mxu0 %v1180_v0 }
  0x49   : > { %967 = vmatpush3.msra.mxu0 %v289_v13 }
  0x4a   : > { %924 = vmatpush3.xpose.msk.msra.mxu1 %vm306_vm1, %v1342_v9  ;;  %968 = vmatprep.subr.mxu0 %v1180_v0 }
  0x4b   : > { %925 = vmatprep.subr.mxu1 %v1180_v0  ;;  %969 = vmatpush3.msra.mxu0 %v288_v14 }
  0x4c   : > { %970 = vmatprep.subr.mxu0 %v1180_v0 }
  0x4d   : > { %971 = vmatpush3.msra.mxu0 %v287_v15 }
  0x4e   : > { %926 = vmatpush3.xpose.msk.msra.mxu1 %vm306_vm1, %v1348_v10  ;;  %972 = vmatprep.subr.mxu0 %v1180_v0 }
  0x4f   : > { %927 = vmatprep.subr.mxu1 %v1180_v0  ;;  %973 = vmatpush3.msra.mxu0 %v286_v16 }
  0x50   : > { %977 = vmatprep.subr.mxu0 %v1180_v0 }
  0x52   : > { %928 = vmatpush3.xpose.msk.msra.mxu1 %vm306_vm1, %v1354_v11 }
  0x53   : > { %929 = vmatprep.subr.mxu1 %v1180_v0 }
  0x56   : > { %930 = vmatpush3.xpose.msk.msra.mxu1 %vm306_vm1, %v290_v12 }
  0x57   : > { %931 = vmatprep.subr.mxu1 %v1180_v0 }
  0x5a   : > { %932 = vmatpush3.xpose.msk.msra.mxu1 %vm306_vm1, %v289_v13 }
  0x5b   : > { %933 = vmatprep.subr.mxu1 %v1180_v0 }
  0x5e   : > { %934 = vmatpush3.xpose.msk.msra.mxu1 %vm306_vm1, %v288_v14 }
  0x5f   : > { %935 = vmatprep.subr.mxu1 %v1180_v0 }
  0x62   : > { %936 = vmatpush3.xpose.msk.msra.mxu1 %vm306_vm1, %v287_v15 }
  0x63   : > { %937 = vmatprep.subr.mxu1 %v1180_v0 }
  0x66   : > { %938 = vmatpush3.xpose.msk.msra.mxu1 %vm306_vm1, %v286_v16 }
  0x69   : > { %940 = vmatmul.mubr.msk.f32.vlgmr.msra.gmra.mxu1 %vm306_vm1, %v285_v17 }
  0xf0   : > { %v376_v33 = vpop.f32.mrf.mxu0 }
  0xf2   : > { %v906_v34 = vpop.f32.mrf.mxu0 }
 0x129   : > { %v494_v21 = vpop.f32.mrf.mxu1 }
 0x12a   : > { %v503_v22 = vsel %vm502_vm2, %v494_v21, -inf }
 0x12b   : > { %504 = vmax.xlane.f32.xlu0 %v503_v22  ;;  %v941_v23 = vpop.f32.mrf.mxu1 }
 0x1b4   : > { %v505_v28 = vpop.xlane.xlu0 %504 }
 0x1b5   : > { %v506_v29 = vmax.f32 %v505_v28, -1e+30 }
 0x1b7   : > { %v507_v30 = vsub.f32 %v503_v22, %v506_v29 }
 0x1b9   : > { %v508_v31 = vmul.f32 1.442695, %v507_v30 }
 0x1bb   : > { %1051 = vpow2.f32 %v508_v31 }
 0x1c8   : > { %v1052_v32 = vpop.eup %1051 }
 0x1c9   : > { %510 = vadd.xlane.f32.xlu0 %v1052_v32 }
 0x252   : > { %v511_v35 = vpop.xlane.xlu0 %510 }
 0x253   : > { %vm512_vm3 = vcmp.gt.f32.partialorder %v511_v35, 0.0 }
 0x254   : > { %v513_v36 = vsel %vm512_vm3, %v511_v35, 1.0 }
 0x255   : > { %1053 = vrcp.f32 %v513_v36 }
 0x262   : > { %v1054_v37 = vpop.eup %1053 }
 0x263   : > { %v515_v38 = vmul.f32 %v1054_v37, %v1052_v32 }
 0x265   : > { %975 = vmatmul.mubr.f32.vlgmr.msra.gmra.mxu0 %v515_v38  ;;  %516 = vst [vmem:[%s272_s24] sm:$0xff] %v515_v38 }
 0x266   : > { %978 = vmatpush3.msra.mxu0 %v590_v39  ;;  %985 = vmatprep.mubr.msk.f32.mxu0 %vm1181_vm0, %v1180_v0 }
 0x267   : > { %979 = vmatprep.subr.mxu0 %v1180_v0 }
 0x268   : > { %980 = vmatpush3.msra.mxu0 %v589_v40 }
 0x269   : > { %981 = vmatprep.subr.mxu0 %v1180_v0 }
 0x26a   : > { %982 = vmatpush3.msra.mxu0 %v588_v41 }
 0x26b   : > { %983 = vmatprep.subr.mxu0 %v1180_v0 }
 0x26c   : > { %984 = vmatpush3.msra.mxu0 %v587_v42 }
 0x325   : > { %v583_v43 = vpop.f32.mrf.mxu0 }
 0x326   : > { %986 = vmatmul.mubr.msk.f32.vlgmr.msra.gmra.mxu0 %vm306_vm1, %v583_v43 }
 0x327   : > { %v976_v44 = vpop.f32.mrf.mxu0 }
 0x328   : > { %1082 = shalt.err (!%p1079_p10)
}
 0x329   : > { %s1083_s8 = scalar_lea.hbm %s698_s17, 128  ;;  %s1087_s15 = scalar_lea.hbm %s1523_s6, 256 }
 0x32a   : > { %p1084_p11 = scmp.ne.s32.totalorder %s698_s17, %s1083_s8  ;;  %p1088_p1 = scmp.lt.s32.totalorder %s698_s17, %s1523_s6 }
 0x32b   : > { %p1089_p2 = scmp.lt.s32.totalorder %s1087_s15, %s1083_s8 }
 0x32c   : > { %p1085_p12 = pnand %p1084_p11, %p1262_p9 }
 0x32d   : > { %p1090_p3 = por %p1089_p2, %p1088_p1 }
 0x32e   : > { %p1086_p0 = pneg %p1085_p12 }
 0x330   : > { %p1091_p4 = pnand %p1090_p3, %p1086_p0 }
 0x332   : > { %1094 = shalt.err (!%p1091_p4)
}
 0x333   : > { %989 = dma.vmem_to_hbm [thread:$0]  (%p1262_p9), %s701_s20, 128, %s698_s17, %s672_s21  }
 0x334   : > { %s265_s22 = scalar_lea.vmem [#allocation4], %s821_s19  ;;  %s1527_s12 = sshll.u32 %s1169_s28, 7 }
 0x335   : > { %s686_s23 = sshll.u32 %s265_s22, 4  ;;  %s1475_s8 = scalar_lea.hbm %s1522_s5, %s1527_s12  ;;  %s687_s23 = int_to_ptr.vmem [resolvable:$true] %s686_s23 }
 0x336   : > { %s667_s24 = scalar_lea.sflag [#allocation5], %s1426_s18  ;;  %s1095_s10 = scalar_lea.vmem %s687_s23, 128 }
 0x337   : > { %p1096_p5 = scmp.ne.s32.totalorder %s687_s23, %s1095_s10  ;;  %s1183_s17 = smov [#allocation4]  }
 0x338   : > { %s1099_s20 = sshll.u32 %s1183_s17, 4  ;;  %s1100_s20 = int_to_ptr.vmem [resolvable:$false] %s1099_s20 }
 0x339   : > { %p1097_p6 = pnand %p1096_p5, %p1262_p9  ;;  %s1101_s19 = scalar_lea.vmem %s1100_s20, 256 }
 0x33a   : > { %p1102_p8 = scmp.lt.s32.totalorder %s687_s23, %s1100_s20  ;;  %p1103_p10 = scmp.lt.s32.totalorder %s1101_s19, %s1095_s10 }
 0x33b   : > { %p1098_p7 = pneg %p1097_p6 }
 0x33c   : > { %p1104_p11 = por %p1103_p10, %p1102_p8 }
 0x33e   : > { %p1105_p12 = pnand %p1104_p11, %p1098_p7 }
 0x3e6   : > { %v660_v45 = vpop.f32.mrf.mxu0 }
 0x3e7   : > { %v661_v46 = vadd.f32 %v660_v45, %v376_v33 }
 0x3e8   : > { %v987_v47 = vpop.f32.mrf.mxu0 }
 0x3e9   : > { %1055 = vtanh.f32 %v661_v46 }
 0x3f6   : > { %v1056_v48 = vpop.eup %1055 }
 0x3f7   : > { %665 = vst.msk [vmem:[%s265_s22] sm:$0xff] %vm306_vm1, %v1056_v48 }
 0x3f8   : > { %1108 = shalt.err (!%p1105_p12)
}
 0x3f9   : > { %s1109_s28 = scalar_lea.hbm %s1475_s8, 128  ;;  %s1113_s15 = scalar_lea.hbm %s1522_s5, 256 }
 0x3fa   : > { %p1110_p0 = scmp.ne.s32.totalorder %s1475_s8, %s1109_s28  ;;  %p1114_p3 = scmp.lt.s32.totalorder %s1475_s8, %s1522_s5 }
 0x3fb   : > { %p1115_p4 = scmp.lt.s32.totalorder %s1113_s15, %s1109_s28 }
 0x3fc   : > { %p1111_p1 = pnand %p1110_p0, %p1262_p9 }
 0x3fd   : > { %p1116_p5 = por %p1115_p4, %p1114_p3 }
 0x3fe   : > { %p1112_p2 = pneg %p1111_p1 }
 0x400   : > { %p1117_p6 = pnand %p1116_p5, %p1112_p2 }
 0x402   : > { %1120 = shalt.err (!%p1117_p6)
}
 0x403   : > { %988 = dma.vmem_to_hbm [thread:$0]  (%p1262_p9), %s687_s23, 128, %s1475_s8, %s667_s24  }
 0x404 PF: > { %p999_p7 = scmp.ge.s32.totalorder %s1177_s30, 2  ;;  %s712_s12 = sand.u32 1, %s1157_s26  }
 0x405   : > { %s713_s25 = scalar_lea.sflag [#allocation5], %s712_s12 }
 0x406   : > { %p993_p8 = pnand %p999_p7, %p1269_p13 }
 0x408   : > { %p994_p10 = pneg %p993_p8 }
 0x40a   : > { %1148 = dma.done.wait (%p994_p10), %s713_s25, 128  }
 0x40b   : > { %1150 = vsyncadd (%p994_p10), %s713_s25, 4294967168  ;;  %s722_s7 = scalar_lea.sflag [#allocation7], %s712_s12 }
 0x40c   : > { %1152 = dma.done.wait (%p994_p10), %s722_s7, 128  }
 0x40d   : > { %1154 = vsyncadd (%p994_p10), %s722_s7, 4294967168  ;;  %s29_s30 = sadd.s32 1, %s1177_s30   ;;  %s1528_s26 = smov %s1161_s0 }
 0x40e   : > { %p26_p11 = scmp.ge.s32.totalorder %s29_s30, 4   ;;  %s1529_s0 = smov %s1165_s27 }
 0x40f   : > { %s1530_s27 = smov %s1275_s14  ;;  %s1531_s28 = smov %s1173_s29 }
 0x410   : > { %s1532_s29 = smov %s1534_s9  ;;  %28 = sbr.rel (!%p26_p11) target bundleno = 21 (0x15), region = 91 }
 0x415   :  { %727 = vsyncpa [#allocation5], 1 }
 0x416   :  { %729 = vsyncpa [#allocation5 + $0x1], 1 }
 0x417   :  { %730 = vsyncpa [#allocation7], 1 }
 0x418   :  { %732 = vsyncpa [#allocation7 + $0x1], 1 }

</bundles_post_ra>
